<compile_context>
chip_gen: v6e
topology: v6e:2x2x1
jax: 0.10.0
libtpu: 0.0.40
codegen_flags: <defaults>
</compile_context>

<pallas_src>
import functools
import math

import jax
import jax.numpy as jnp
from jax.experimental import pallas as pl
from jax.experimental.pallas import tpu as pltpu

D_MODEL = 32
D_HIDDEN = 64
N_HEADS = 4
D_K = D_MODEL // N_HEADS
EPS = 1e-6


def _layer_norm(x, gamma, beta):
    mean = jnp.mean(x, axis=-1, keepdims=True)
    var = jnp.mean((x - mean) ** 2, axis=-1, keepdims=True)
    inv = jax.lax.rsqrt(var + EPS)
    return (x - mean) * inv * gamma + beta


def encoder_layer_kernel(
    x_ref, wqkv_ref, wo_ref, w1_ref, w2_ref, pv_ref, out_ref, *, seq_len
):
    M = x_ref.shape[0]          # BT * S rows folded into the matmul M dimension
    S = seq_len
    BT = M // S
    cdt = wqkv_ref.dtype        # MXU operand dtype (f32 or bf16); acc stays f32

    # Packed small-parameter slab (one [8, 128] vreg tile).
    bqkv = pv_ref[0:1, 0:3 * D_MODEL]
    bo = pv_ref[1:2, 0:D_MODEL]
    b1 = pv_ref[2:3, 0:D_HIDDEN]
    b2 = pv_ref[3:4, 0:D_MODEL]
    ln1_g = pv_ref[4:5, 0:D_MODEL]
    ln1_b = pv_ref[5:6, 0:D_MODEL]
    ln2_g = pv_ref[6:7, 0:D_MODEL]
    ln2_b = pv_ref[7:8, 0:D_MODEL]

    x = x_ref[...]              # [M, D] float32

    # ---------------- fused Q/K/V projection: one MXU pass ----------------
    # 1/sqrt(D_K) is already folded into the Q columns of wqkv (and bqkv).
    qkv = jnp.dot(x.astype(cdt), wqkv_ref[...],
                  preferred_element_type=jnp.float32) + bqkv
    q = qkv[:, 0:D_MODEL]
    k = qkv[:, D_MODEL:2 * D_MODEL]
    v = qkv[:, 2 * D_MODEL:3 * D_MODEL]

    # ---------------- multi-head attention (all heads batched) -------------
    def split_heads(t):  # [M, D] -> [H*BT, S, DK]  (head-major batch order)
        return jnp.concatenate(
            [t[:, h * D_K:(h + 1) * D_K].reshape(BT, S, D_K)
             for h in range(N_HEADS)],
            axis=0)

    qh = split_heads(q).astype(cdt)
    kh = split_heads(k).astype(cdt)
    vh = split_heads(v).astype(cdt)

    scores = jnp.einsum("bqd,bkd->bqk", qh, kh,
                        preferred_element_type=jnp.float32)   # [H*BT, S, S]
    scores = scores - jnp.max(scores, axis=-1, keepdims=True)
    p = jnp.exp(scores)                                        # f32 (v5e-safe)
    row_sum = jnp.sum(p, axis=-1, keepdims=True)               # [H*BT, S, 1]

    # Unnormalized PV matmul first; normalize the (much smaller) context.
    ctx = jnp.einsum("bqk,bkd->bqd", p.astype(cdt), vh,
                     preferred_element_type=jnp.float32)       # [H*BT, S, DK]
    ctx = ctx * pl.reciprocal(row_sum, approx=True)

    # merge heads back to [M, D]
    ctx4 = ctx.reshape(N_HEADS, BT, S, D_K)
    concat = jnp.concatenate(
        [ctx4[h].reshape(M, D_K) for h in range(N_HEADS)], axis=-1)

    attn = jnp.dot(concat.astype(cdt), wo_ref[...],
                   preferred_element_type=jnp.float32) + bo
    attn = _layer_norm(attn + x, ln1_g, ln1_b)

    # ------------- PossFeedForward: Linear->ReLU->Linear + res + LN --------
    h1 = jnp.dot(attn.astype(cdt), w1_ref[...],
                 preferred_element_type=jnp.float32) + b1
    h1 = jnp.maximum(h1, 0.0)
    ff = jnp.dot(h1.astype(cdt), w2_ref[...],
                 preferred_element_type=jnp.float32) + b2
    out_ref[...] = _layer_norm(ff + attn, ln2_g, ln2_b)


def _vmem_limits():
    """(vmem_limit_bytes, per-step tile budget) for the running TPU generation."""
    try:
        phys = int(pltpu.get_tpu_info().vmem_capacity_bytes)
    except Exception:
        phys = 64 << 20          # v7x per-TensorCore physical; safe everywhere
    limit = min(phys * 3 // 4, 96 << 20)   # ~48 MiB on v7x, 96 MiB on v5e/v6e
    tile_budget = limit // 2     # headroom: weight buffers, compiler scratch
    return limit, tile_budget


def _tile_bytes_per_batch_elem(S):
    scores_p = 2 * N_HEADS * S * S * 4       # scores + exp(scores), f32
    activations = 3000 * S                   # qkv/q/k/v/heads/ctx/attn/ffn copies
    io = 4 * S * D_MODEL * 4                 # double-buffered input + output tiles
    return scores_p + activations + io


def _pick_batch_tile(B, S, tile_budget_bytes):
    """Batch elements folded per grid step (M = BT*S matmul rows), VMEM-aware."""
    per_elem = _tile_bytes_per_batch_elem(S)
    max_bt = max(1, tile_budget_bytes // per_elem)
    target_rows = 4096                       # amortize ~0.35 us/step overhead
    divisors = [d for d in range(1, B + 1) if B % d == 0]

    def legal(d):  # (8,128) second-minor constraint on the [BT*S, D] block
        return (d * S) % 8 == 0 or d == B

    cands = [d for d in divisors if legal(d) and d <= max_bt]
    multi = [d for d in cands if d < B]      # prefer >=2 grid steps (v7x 2 TCs)
    if multi:
        cands = multi
    if not cands:
        # TODO(synk): very large S needs flash-style KV tiling; fall back to
        # a single full-array step and let the compiler do its best.
        return B
    under = [d for d in cands if d * S <= target_rows]
    return max(under) if under else min(cands)


def encoder_layer(x, params, *, weight_dtype=jnp.float32, batch_tile=None):
    B, S, D = x.shape
    assert D == D_MODEL
    vmem_limit, tile_budget = _vmem_limits()
    BT = batch_tile if batch_tile is not None else _pick_batch_tile(B, S, tile_budget)
    assert B % BT == 0
    M_TILE = BT * S

    # Fused QKV weight [D, 3D] with 1/sqrt(D_K) folded into the Q columns;
    # matmul weights optionally cast to bf16 (recommended on all generations).
    scale = 1.0 / math.sqrt(D_K)
    wqkv = jnp.concatenate(
        [params["wq"] * scale, params["wk"], params["wv"]], axis=1
    ).astype(weight_dtype)
    wo = params["wo"].astype(weight_dtype)
    w1 = params["w1"].astype(weight_dtype)
    w2 = params["w2"].astype(weight_dtype)

    # Pack every small vector (biases + LN affine) into one [8, 128] f32 slab.
    def row(v):
        v = jnp.asarray(v, jnp.float32).reshape(-1)
        return jnp.pad(v, (0, 128 - v.shape[0]))

    pvec = jnp.stack(
        [
            row(jnp.concatenate([params["bq"].reshape(-1) * scale,
                                 params["bk"].reshape(-1),
                                 params["bv"].reshape(-1)])),
            row(params["bo"]),
            row(params["b1"]),
            row(params["b2"]),
            row(params["ln1_g"]),
            row(params["ln1_b"]),
            row(params["ln2_g"]),
            row(params["ln2_b"]),
        ],
        axis=0,
    )  # [8, 128]

    x2d = x.reshape(B * S, D)
    kernel = functools.partial(encoder_layer_kernel, seq_len=S)

    out2d = pl.pallas_call(
        kernel,
        out_shape=jax.ShapeDtypeStruct((B * S, D), jnp.float32),
        grid_spec=pltpu.PrefetchScalarGridSpec(
            num_scalar_prefetch=0,
            grid=(B // BT,),
            in_specs=[
                pl.BlockSpec((M_TILE, D), lambda i: (i, 0)),
                pl.BlockSpec(wqkv.shape, lambda i: (0, 0)),
                pl.BlockSpec(wo.shape, lambda i: (0, 0)),
                pl.BlockSpec(w1.shape, lambda i: (0, 0)),
                pl.BlockSpec(w2.shape, lambda i: (0, 0)),
                pl.BlockSpec(pvec.shape, lambda i: (0, 0)),
            ],
            out_specs=pl.BlockSpec((M_TILE, D), lambda i: (i, 0)),
        ),
        compiler_params=pltpu.CompilerParams(
            dimension_semantics=("parallel",),
            vmem_limit_bytes=int(vmem_limit),
        ),
    )(x2d, wqkv, wo, w1, w2, pvec)

    return out2d.reshape(B, S, D)


def make_params(key):
    ks = jax.random.split(key, 8)

    def lin(k, d_in, d_out):
        # PyTorch Linear: weight [out, in]; pre-transpose to [in, out].
        w = jax.random.normal(k, (d_in, d_out), jnp.float32) * (1.0 / math.sqrt(d_in))
        b = jnp.zeros((1, d_out), jnp.float32)
        return w, b

    wq, bq = lin(ks[0], D_MODEL, D_MODEL)
    wk, bk = lin(ks[1], D_MODEL, D_MODEL)
    wv, bv = lin(ks[2], D_MODEL, D_MODEL)
    wo, bo = lin(ks[3], D_MODEL, D_MODEL)
    w1, b1 = lin(ks[4], D_MODEL, D_HIDDEN)
    w2, b2 = lin(ks[5], D_HIDDEN, D_MODEL)

    return {
        "wq": wq, "bq": bq, "wk": wk, "bk": bk, "wv": wv, "bv": bv,
        "wo": wo, "bo": bo,
        "ln1_g": jnp.ones((1, D_MODEL), jnp.float32),
        "ln1_b": jnp.zeros((1, D_MODEL), jnp.float32),
        "w1": w1, "b1": b1, "w2": w2, "b2": b2,
        "ln2_g": jnp.ones((1, D_MODEL), jnp.float32),
        "ln2_b": jnp.zeros((1, D_MODEL), jnp.float32),
    }


def encoder_layer_ref(x, p):
    """Pure-JAX reference mirroring the PyTorch forward."""
    q = x @ p["wq"] + p["bq"]
    k = x @ p["wk"] + p["bk"]
    v = x @ p["wv"] + p["bv"]
    B, S, D = x.shape
    qh = q.reshape(B, S, N_HEADS, D_K).transpose(0, 2, 1, 3)
    kh = k.reshape(B, S, N_HEADS, D_K).transpose(0, 2, 1, 3)
    vh = v.reshape(B, S, N_HEADS, D_K).transpose(0, 2, 1, 3)
    scores = jnp.einsum("bhqd,bhkd->bhqk", qh, kh) / math.sqrt(D_K)
    p_attn = jax.nn.softmax(scores, axis=-1)
    ctx = jnp.einsum("bhqk,bhkd->bhqd", p_attn, vh)
    ctx = ctx.transpose(0, 2, 1, 3).reshape(B, S, D)
    attn_out = ctx @ p["wo"] + p["bo"] + x
    attn_out = _layer_norm(attn_out, p["ln1_g"], p["ln1_b"])
    h1 = jnp.maximum(attn_out @ p["w1"] + p["b1"], 0.0)
    ff = h1 @ p["w2"] + p["b2"] + attn_out
    return _layer_norm(ff, p["ln2_g"], p["ln2_b"])


if __name__ == "__main__":
    key = jax.random.PRNGKey(0)
    kx, kp = jax.random.split(key)

    B, S = 2, 8
    x = jax.random.normal(kx, (B, S, D_MODEL), jnp.float32)
    params = make_params(kp)

    out = jax.block_until_ready(encoder_layer(x, params))
    ref = encoder_layer_ref(x, params)
    assert out.shape == (B, S, D_MODEL)
    assert jnp.allclose(out, ref, atol=5e-3, rtol=5e-3), "mismatch vs JAX reference"

    # bf16 MXU-operand path (recommended on v5e/v6e/v7x): f32 accumulation,
    # f32 softmax/LayerNorm vector math; loose smoke-test tolerance vs f32 ref.
    out_bf16 = jax.block_until_ready(
        encoder_layer(x, params, weight_dtype=jnp.bfloat16))
    assert jnp.allclose(out_bf16, ref, atol=1e-1, rtol=1e-1), "bf16 path mismatch"

    print("KERNEL_OK")
</pallas_src>

<mosaic_0001>
module attributes {stable_mosaic.version = 11 : i64} {
  func.func @encoder_layer_kernel(%arg0: i32, %arg1: memref<8x32xf32, #tpu.memory_space<vmem>>, %arg2: memref<32x96xf32, #tpu.memory_space<vmem>>, %arg3: memref<32x32xf32, #tpu.memory_space<vmem>>, %arg4: memref<32x64xf32, #tpu.memory_space<vmem>>, %arg5: memref<64x32xf32, #tpu.memory_space<vmem>>, %arg6: memref<8x128xf32, #tpu.memory_space<vmem>>, %arg7: memref<8x32xf32, #tpu.memory_space<vmem>>) attributes {dimension_semantics = [#tpu.dimension_semantics<parallel>], iteration_bounds = array<i64: 2>, scalar_prefetch = 0 : i64, scratch_operands = 0 : i64, tpu.core_type = #tpu.core_type<tc>, window_params = [{transform_indices = @transform_0, window_bounds = array<i64: 8, 32>}, {pipeline_mode = #tpu.pipeline_mode<synchronous>, transform_indices = @transform_1, window_bounds = array<i64: 32, 96>}, {pipeline_mode = #tpu.pipeline_mode<synchronous>, transform_indices = @transform_2, window_bounds = array<i64: 32, 32>}, {pipeline_mode = #tpu.pipeline_mode<synchronous>, transform_indices = @transform_3, window_bounds = array<i64: 32, 64>}, {pipeline_mode = #tpu.pipeline_mode<synchronous>, transform_indices = @transform_4, window_bounds = array<i64: 64, 32>}, {pipeline_mode = #tpu.pipeline_mode<synchronous>, transform_indices = @transform_5, window_bounds = array<i64: 8, 128>}, {transform_indices = @transform_6, window_bounds = array<i64: 8, 32>}]} {
    %c0 = arith.constant 0 : index
    %c0_0 = arith.constant 0 : index
    %0 = vector.load %arg6[%c0, %c0_0] : memref<8x128xf32, #tpu.memory_space<vmem>>, vector<1x96xf32>
    %c1 = arith.constant 1 : index
    %c0_1 = arith.constant 0 : index
    %1 = vector.load %arg6[%c1, %c0_1] : memref<8x128xf32, #tpu.memory_space<vmem>>, vector<1x32xf32>
    %c2 = arith.constant 2 : index
    %c0_2 = arith.constant 0 : index
    %2 = vector.load %arg6[%c2, %c0_2] : memref<8x128xf32, #tpu.memory_space<vmem>>, vector<1x64xf32>
    %c3 = arith.constant 3 : index
    %c0_3 = arith.constant 0 : index
    %3 = vector.load %arg6[%c3, %c0_3] : memref<8x128xf32, #tpu.memory_space<vmem>>, vector<1x32xf32>
    %c4 = arith.constant 4 : index
    %c0_4 = arith.constant 0 : index
    %4 = vector.load %arg6[%c4, %c0_4] : memref<8x128xf32, #tpu.memory_space<vmem>>, vector<1x32xf32>
    %c5 = arith.constant 5 : index
    %c0_5 = arith.constant 0 : index
    %5 = vector.load %arg6[%c5, %c0_5] : memref<8x128xf32, #tpu.memory_space<vmem>>, vector<1x32xf32>
    %c6 = arith.constant 6 : index
    %c0_6 = arith.constant 0 : index
    %6 = vector.load %arg6[%c6, %c0_6] : memref<8x128xf32, #tpu.memory_space<vmem>>, vector<1x32xf32>
    %c7 = arith.constant 7 : index
    %c0_7 = arith.constant 0 : index
    %7 = vector.load %arg6[%c7, %c0_7] : memref<8x128xf32, #tpu.memory_space<vmem>>, vector<1x32xf32>
    %c0_8 = arith.constant 0 : index
    %c0_9 = arith.constant 0 : index
    %8 = vector.load %arg1[%c0_8, %c0_9] : memref<8x32xf32, #tpu.memory_space<vmem>>, vector<8x32xf32>
    %c0_10 = arith.constant 0 : index
    %c0_11 = arith.constant 0 : index
    %9 = vector.load %arg2[%c0_10, %c0_11] : memref<32x96xf32, #tpu.memory_space<vmem>>, vector<32x96xf32>
    %cst = arith.constant dense<0.000000e+00> : vector<8x96xf32>
    %10 = tpu.matmul %8, %9, %cst {dimension_numbers = #tpu.dot_dimension_numbers<[1], [0], [0], [1], [0, 0, 1, 1], [], []>} : vector<8x32xf32>, vector<32x96xf32>, vector<8x96xf32> -> vector<8x96xf32>
    %11 = vector.broadcast %0 : vector<1x96xf32> to vector<8x96xf32>
    %12 = arith.addf %10, %11 : vector<8x96xf32>
    %13 = vector.extract_strided_slice %12 {offsets = [0, 0], sizes = [8, 32], strides = [1, 1]} : vector<8x96xf32> to vector<8x32xf32>
    %14 = vector.extract_strided_slice %12 {offsets = [0, 32], sizes = [8, 32], strides = [1, 1]} : vector<8x96xf32> to vector<8x32xf32>
    %15 = vector.extract_strided_slice %12 {offsets = [0, 64], sizes = [8, 32], strides = [1, 1]} : vector<8x96xf32> to vector<8x32xf32>
    %16 = vector.extract_strided_slice %13 {offsets = [0, 0], sizes = [8, 8], strides = [1, 1]} : vector<8x32xf32> to vector<8x8xf32>
    %17 = vector.shape_cast %16 : vector<8x8xf32> to vector<1x8x8xf32>
    %18 = vector.extract_strided_slice %13 {offsets = [0, 8], sizes = [8, 8], strides = [1, 1]} : vector<8x32xf32> to vector<8x8xf32>
    %19 = vector.shape_cast %18 : vector<8x8xf32> to vector<1x8x8xf32>
    %20 = vector.extract_strided_slice %13 {offsets = [0, 16], sizes = [8, 8], strides = [1, 1]} : vector<8x32xf32> to vector<8x8xf32>
    %21 = vector.shape_cast %20 : vector<8x8xf32> to vector<1x8x8xf32>
    %22 = vector.extract_strided_slice %13 {offsets = [0, 24], sizes = [8, 8], strides = [1, 1]} : vector<8x32xf32> to vector<8x8xf32>
    %23 = vector.shape_cast %22 : vector<8x8xf32> to vector<1x8x8xf32>
    %24 = tpu.concatenate %17, %19, %21, %23 in 0 : vector<1x8x8xf32>, vector<1x8x8xf32>, vector<1x8x8xf32>, vector<1x8x8xf32> -> vector<4x8x8xf32>
    %25 = vector.extract_strided_slice %14 {offsets = [0, 0], sizes = [8, 8], strides = [1, 1]} : vector<8x32xf32> to vector<8x8xf32>
    %26 = vector.shape_cast %25 : vector<8x8xf32> to vector<1x8x8xf32>
    %27 = vector.extract_strided_slice %14 {offsets = [0, 8], sizes = [8, 8], strides = [1, 1]} : vector<8x32xf32> to vector<8x8xf32>
    %28 = vector.shape_cast %27 : vector<8x8xf32> to vector<1x8x8xf32>
    %29 = vector.extract_strided_slice %14 {offsets = [0, 16], sizes = [8, 8], strides = [1, 1]} : vector<8x32xf32> to vector<8x8xf32>
    %30 = vector.shape_cast %29 : vector<8x8xf32> to vector<1x8x8xf32>
    %31 = vector.extract_strided_slice %14 {offsets = [0, 24], sizes = [8, 8], strides = [1, 1]} : vector<8x32xf32> to vector<8x8xf32>
    %32 = vector.shape_cast %31 : vector<8x8xf32> to vector<1x8x8xf32>
    %33 = tpu.concatenate %26, %28, %30, %32 in 0 : vector<1x8x8xf32>, vector<1x8x8xf32>, vector<1x8x8xf32>, vector<1x8x8xf32> -> vector<4x8x8xf32>
    %34 = vector.extract_strided_slice %15 {offsets = [0, 0], sizes = [8, 8], strides = [1, 1]} : vector<8x32xf32> to vector<8x8xf32>
    %35 = vector.shape_cast %34 : vector<8x8xf32> to vector<1x8x8xf32>
    %36 = vector.extract_strided_slice %15 {offsets = [0, 8], sizes = [8, 8], strides = [1, 1]} : vector<8x32xf32> to vector<8x8xf32>
    %37 = vector.shape_cast %36 : vector<8x8xf32> to vector<1x8x8xf32>
    %38 = vector.extract_strided_slice %15 {offsets = [0, 16], sizes = [8, 8], strides = [1, 1]} : vector<8x32xf32> to vector<8x8xf32>
    %39 = vector.shape_cast %38 : vector<8x8xf32> to vector<1x8x8xf32>
    %40 = vector.extract_strided_slice %15 {offsets = [0, 24], sizes = [8, 8], strides = [1, 1]} : vector<8x32xf32> to vector<8x8xf32>
    %41 = vector.shape_cast %40 : vector<8x8xf32> to vector<1x8x8xf32>
    %42 = tpu.concatenate %35, %37, %39, %41 in 0 : vector<1x8x8xf32>, vector<1x8x8xf32>, vector<1x8x8xf32>, vector<1x8x8xf32> -> vector<4x8x8xf32>
    "tpu.trace_start"() <{level = 10 : i32, message = "bqd,bkd->bqk"}> : () -> ()
    %cst_12 = arith.constant dense<0.000000e+00> : vector<4x8x8xf32>
    %43 = tpu.matmul %24, %33, %cst_12 {dimension_numbers = #tpu.dot_dimension_numbers<[2], [2], [1], [1], [0, 0, 0, 1, 1, 1], [0], [0]>} : vector<4x8x8xf32>, vector<4x8x8xf32>, vector<4x8x8xf32> -> vector<4x8x8xf32>
    "tpu.trace_stop"() : () -> ()
    %cst_13 = arith.constant dense<0xFF800000> : vector<4x8xf32>
    %44 = vector.multi_reduction <maximumf>, %43, %cst_13 [2] : vector<4x8x8xf32> to vector<4x8xf32>
    %45 = vector.shape_cast %44 : vector<4x8xf32> to vector<4x8x1xf32>
    %46 = vector.broadcast %45 : vector<4x8x1xf32> to vector<4x8x8xf32>
    %47 = arith.subf %43, %46 : vector<4x8x8xf32>
    %48 = math.exp %47 : vector<4x8x8xf32>
    %cst_14 = arith.constant dense<0.000000e+00> : vector<4x8xf32>
    %49 = vector.multi_reduction <add>, %48, %cst_14 [2] : vector<4x8x8xf32> to vector<4x8xf32>
    %50 = vector.shape_cast %49 : vector<4x8xf32> to vector<4x8x1xf32>
    "tpu.trace_start"() <{level = 10 : i32, message = "bqk,bkd->bqd"}> : () -> ()
    %cst_15 = arith.constant dense<0.000000e+00> : vector<4x8x8xf32>
    %51 = tpu.matmul %48, %42, %cst_15 {dimension_numbers = #tpu.dot_dimension_numbers<[2], [1], [1], [2], [0, 0, 0, 1, 1, 2], [0], [0]>} : vector<4x8x8xf32>, vector<4x8x8xf32>, vector<4x8x8xf32> -> vector<4x8x8xf32>
    "tpu.trace_stop"() : () -> ()
    %52 = tpu.reciprocal %50 {approx = true} : vector<4x8x1xf32> -> vector<4x8x1xf32>
    %53 = vector.broadcast %52 : vector<4x8x1xf32> to vector<4x8x8xf32>
    %54 = arith.mulf %51, %53 : vector<4x8x8xf32>
    %55 = vector.shape_cast %54 : vector<4x8x8xf32> to vector<4x1x8x8xf32>
    %56 = vector.extract_strided_slice %55 {offsets = [0, 0, 0, 0], sizes = [1, 1, 8, 8], strides = [1, 1, 1, 1]} : vector<4x1x8x8xf32> to vector<1x1x8x8xf32>
    %57 = vector.shape_cast %56 : vector<1x1x8x8xf32> to vector<1x8x8xf32>
    %58 = vector.shape_cast %57 : vector<1x8x8xf32> to vector<8x8xf32>
    %59 = vector.extract_strided_slice %55 {offsets = [1, 0, 0, 0], sizes = [1, 1, 8, 8], strides = [1, 1, 1, 1]} : vector<4x1x8x8xf32> to vector<1x1x8x8xf32>
    %60 = vector.shape_cast %59 : vector<1x1x8x8xf32> to vector<1x8x8xf32>
    %61 = vector.shape_cast %60 : vector<1x8x8xf32> to vector<8x8xf32>
    %62 = vector.extract_strided_slice %55 {offsets = [2, 0, 0, 0], sizes = [1, 1, 8, 8], strides = [1, 1, 1, 1]} : vector<4x1x8x8xf32> to vector<1x1x8x8xf32>
    %63 = vector.shape_cast %62 : vector<1x1x8x8xf32> to vector<1x8x8xf32>
    %64 = vector.shape_cast %63 : vector<1x8x8xf32> to vector<8x8xf32>
    %65 = vector.extract_strided_slice %55 {offsets = [3, 0, 0, 0], sizes = [1, 1, 8, 8], strides = [1, 1, 1, 1]} : vector<4x1x8x8xf32> to vector<1x1x8x8xf32>
    %66 = vector.shape_cast %65 : vector<1x1x8x8xf32> to vector<1x8x8xf32>
    %67 = vector.shape_cast %66 : vector<1x8x8xf32> to vector<8x8xf32>
    %68 = tpu.concatenate %58, %61, %64, %67 in 1 : vector<8x8xf32>, vector<8x8xf32>, vector<8x8xf32>, vector<8x8xf32> -> vector<8x32xf32>
    %c0_16 = arith.constant 0 : index
    %c0_17 = arith.constant 0 : index
    %69 = vector.load %arg3[%c0_16, %c0_17] : memref<32x32xf32, #tpu.memory_space<vmem>>, vector<32x32xf32>
    %cst_18 = arith.constant dense<0.000000e+00> : vector<8x32xf32>
    %70 = tpu.matmul %68, %69, %cst_18 {dimension_numbers = #tpu.dot_dimension_numbers<[1], [0], [0], [1], [0, 0, 1, 1], [], []>} : vector<8x32xf32>, vector<32x32xf32>, vector<8x32xf32> -> vector<8x32xf32>
    %71 = vector.broadcast %1 : vector<1x32xf32> to vector<8x32xf32>
    %72 = arith.addf %70, %71 : vector<8x32xf32>
    %73 = arith.addf %72, %8 : vector<8x32xf32>
    %cst_19 = arith.constant dense<0.000000e+00> : vector<8xf32>
    %74 = vector.multi_reduction <add>, %73, %cst_19 [1] : vector<8x32xf32> to vector<8xf32>
    %75 = vector.shape_cast %74 : vector<8xf32> to vector<8x1xf32>
    %cst_20 = arith.constant 3.200000e+01 : f32
    %76 = vector.broadcast %cst_20 : f32 to vector<8x1xf32>
    %77 = arith.divf %75, %76 : vector<8x1xf32>
    %78 = vector.broadcast %77 : vector<8x1xf32> to vector<8x32xf32>
    %79 = arith.subf %73, %78 : vector<8x32xf32>
    %80 = arith.mulf %79, %79 : vector<8x32xf32>
    %cst_21 = arith.constant dense<0.000000e+00> : vector<8xf32>
    %81 = vector.multi_reduction <add>, %80, %cst_21 [1] : vector<8x32xf32> to vector<8xf32>
    %82 = vector.shape_cast %81 : vector<8xf32> to vector<8x1xf32>
    %cst_22 = arith.constant 3.200000e+01 : f32
    %83 = vector.broadcast %cst_22 : f32 to vector<8x1xf32>
    %84 = arith.divf %82, %83 : vector<8x1xf32>
    %cst_23 = arith.constant 9.99999997E-7 : f32
    %85 = vector.broadcast %cst_23 : f32 to vector<8x1xf32>
    %86 = arith.addf %84, %85 : vector<8x1xf32>
    %87 = math.rsqrt %86 : vector<8x1xf32>
    %88 = vector.broadcast %77 : vector<8x1xf32> to vector<8x32xf32>
    %89 = arith.subf %73, %88 : vector<8x32xf32>
    %90 = vector.broadcast %87 : vector<8x1xf32> to vector<8x32xf32>
    %91 = arith.mulf %89, %90 : vector<8x32xf32>
    %92 = vector.broadcast %4 : vector<1x32xf32> to vector<8x32xf32>
    %93 = arith.mulf %91, %92 : vector<8x32xf32>
    %94 = vector.broadcast %5 : vector<1x32xf32> to vector<8x32xf32>
    %95 = arith.addf %93, %94 : vector<8x32xf32>
    %c0_24 = arith.constant 0 : index
    %c0_25 = arith.constant 0 : index
    %96 = vector.load %arg4[%c0_24, %c0_25] : memref<32x64xf32, #tpu.memory_space<vmem>>, vector<32x64xf32>
    %cst_26 = arith.constant dense<0.000000e+00> : vector<8x64xf32>
    %97 = tpu.matmul %95, %96, %cst_26 {dimension_numbers = #tpu.dot_dimension_numbers<[1], [0], [0], [1], [0, 0, 1, 1], [], []>} : vector<8x32xf32>, vector<32x64xf32>, vector<8x64xf32> -> vector<8x64xf32>
    %98 = vector.broadcast %2 : vector<1x64xf32> to vector<8x64xf32>
    %99 = arith.addf %97, %98 : vector<8x64xf32>
    %cst_27 = arith.constant 0.000000e+00 : f32
    %100 = vector.broadcast %cst_27 : f32 to vector<8x64xf32>
    %101 = arith.maximumf %99, %100 : vector<8x64xf32>
    %c0_28 = arith.constant 0 : index
    %c0_29 = arith.constant 0 : index
    %102 = vector.load %arg5[%c0_28, %c0_29] : memref<64x32xf32, #tpu.memory_space<vmem>>, vector<64x32xf32>
    %cst_30 = arith.constant dense<0.000000e+00> : vector<8x32xf32>
    %103 = tpu.matmul %101, %102, %cst_30 {dimension_numbers = #tpu.dot_dimension_numbers<[1], [0], [0], [1], [0, 0, 1, 1], [], []>} : vector<8x64xf32>, vector<64x32xf32>, vector<8x32xf32> -> vector<8x32xf32>
    %104 = vector.broadcast %3 : vector<1x32xf32> to vector<8x32xf32>
    %105 = arith.addf %103, %104 : vector<8x32xf32>
    %106 = arith.addf %105, %95 : vector<8x32xf32>
    %cst_31 = arith.constant dense<0.000000e+00> : vector<8xf32>
    %107 = vector.multi_reduction <add>, %106, %cst_31 [1] : vector<8x32xf32> to vector<8xf32>
    %108 = vector.shape_cast %107 : vector<8xf32> to vector<8x1xf32>
    %cst_32 = arith.constant 3.200000e+01 : f32
    %109 = vector.broadcast %cst_32 : f32 to vector<8x1xf32>
    %110 = arith.divf %108, %109 : vector<8x1xf32>
    %111 = vector.broadcast %110 : vector<8x1xf32> to vector<8x32xf32>
    %112 = arith.subf %106, %111 : vector<8x32xf32>
    %113 = arith.mulf %112, %112 : vector<8x32xf32>
    %cst_33 = arith.constant dense<0.000000e+00> : vector<8xf32>
    %114 = vector.multi_reduction <add>, %113, %cst_33 [1] : vector<8x32xf32> to vector<8xf32>
    %115 = vector.shape_cast %114 : vector<8xf32> to vector<8x1xf32>
    %cst_34 = arith.constant 3.200000e+01 : f32
    %116 = vector.broadcast %cst_34 : f32 to vector<8x1xf32>
    %117 = arith.divf %115, %116 : vector<8x1xf32>
    %cst_35 = arith.constant 9.99999997E-7 : f32
    %118 = vector.broadcast %cst_35 : f32 to vector<8x1xf32>
    %119 = arith.addf %117, %118 : vector<8x1xf32>
    %120 = math.rsqrt %119 : vector<8x1xf32>
    %121 = vector.broadcast %110 : vector<8x1xf32> to vector<8x32xf32>
    %122 = arith.subf %106, %121 : vector<8x32xf32>
    %123 = vector.broadcast %120 : vector<8x1xf32> to vector<8x32xf32>
    %124 = arith.mulf %122, %123 : vector<8x32xf32>
    %125 = vector.broadcast %6 : vector<1x32xf32> to vector<8x32xf32>
    %126 = arith.mulf %124, %125 : vector<8x32xf32>
    %127 = vector.broadcast %7 : vector<1x32xf32> to vector<8x32xf32>
    %128 = arith.addf %126, %127 : vector<8x32xf32>
    %c0_36 = arith.constant 0 : index
    %c0_37 = arith.constant 0 : index
    %129 = vector.load %arg7[%c0_36, %c0_37] : memref<8x32xf32, #tpu.memory_space<vmem>>, vector<8x32xf32>
    tpu.vector_store %arg7[%c0_36, %c0_37], %128 {strides = array<i32>} : memref<8x32xf32, #tpu.memory_space<vmem>>, vector<8x32xf32>,
    return
  }
  func.func @transform_0(%arg0: i32) -> (i32, i32) {
    %c0_i32 = arith.constant 0 : i32
    %c0_i32_0 = arith.constant 0 : i32
    return %arg0, %c0_i32 : i32, i32
  }
  func.func @transform_1(%arg0: i32) -> (i32, i32) {
    %c0_i32 = arith.constant 0 : i32
    %c0_i32_0 = arith.constant 0 : i32
    %c0_i32_1 = arith.constant 0 : i32
    return %c0_i32, %c0_i32_0 : i32, i32
  }
  func.func @transform_2(%arg0: i32) -> (i32, i32) {
    %c0_i32 = arith.constant 0 : i32
    %c0_i32_0 = arith.constant 0 : i32
    %c0_i32_1 = arith.constant 0 : i32
    return %c0_i32, %c0_i32_0 : i32, i32
  }
  func.func @transform_3(%arg0: i32) -> (i32, i32) {
    %c0_i32 = arith.constant 0 : i32
    %c0_i32_0 = arith.constant 0 : i32
    %c0_i32_1 = arith.constant 0 : i32
    return %c0_i32, %c0_i32_0 : i32, i32
  }
  func.func @transform_4(%arg0: i32) -> (i32, i32) {
    %c0_i32 = arith.constant 0 : i32
    %c0_i32_0 = arith.constant 0 : i32
    %c0_i32_1 = arith.constant 0 : i32
    return %c0_i32, %c0_i32_0 : i32, i32
  }
  func.func @transform_5(%arg0: i32) -> (i32, i32) {
    %c0_i32 = arith.constant 0 : i32
    %c0_i32_0 = arith.constant 0 : i32
    %c0_i32_1 = arith.constant 0 : i32
    return %c0_i32, %c0_i32_0 : i32, i32
  }
  func.func @transform_6(%arg0: i32) -> (i32, i32) {
    %c0_i32 = arith.constant 0 : i32
    %c0_i32_0 = arith.constant 0 : i32
    return %arg0, %c0_i32 : i32, i32
  }
}

</mosaic_0001>

<bundles_post_ra>
// kernel: tpu_custom_call.1
= control target key start
LH: loop header
LB: loop body
LE: loop exit
PB: predicated region body
PF: predicated region fallthrough
CT: control target
= control target key end

     0   :  { %11 = vsyncpa [#allocation3], 0  ;;  %s2121_s0 = inlined_call_operand.hbm [shape: f32[16,32], index: 0, kind: input, shape index: {}]   ;;  %s2122_s1 = inlined_call_operand.vmem [shape: f32[32,96], index: 1, kind: input, shape index: {}]   ;;  %s2123_s2 = inlined_call_operand.vmem [shape: f32[32,32], index: 2, kind: input, shape index: {}]   ;;  %s2124_s3 = inlined_call_operand.vmem [shape: f32[32,64], index: 3, kind: input, shape index: {}]   ;;  %s2125_s4 = inlined_call_operand.vmem [shape: f32[64,32], index: 4, kind: input, shape index: {}]   ;;  %s2126_s5 = inlined_call_operand.vmem [shape: f32[8,128], index: 5, kind: input, shape index: {}]   ;;  %s2127_s6 = inlined_call_operand.hbm [shape: f32[16,32], index: 6, kind: output, shape index: {}]  }
   0x1   :  { %13 = vsyncpa [#allocation3 + $0x1], 0 }
   0x2   :  { %14 = vsyncpa [#allocation4], 0 }
   0x3   :  { %16 = vsyncpa [#allocation4 + $0x1], 0  ;;  %s1803_s21 = smov 0   ;;  %s1805_s22 = smov 0  }
   0x4   :  { %s1807_s23 = smov 0   ;;  %s1809_s24 = smov 0  }
   0x5 LB: > { %s1824_s25 = sadd.s32 4294967295, %s1754_s24   ;;  %s1418_s26 = sadd.s32 4294967294, %s1754_s24   ;;  %s1754_s24 = sphi %s1809_s24, %s2144_s24   ;;  %s1750_s23 = sphi %s1807_s23, %s2143_s23   ;;  %s1746_s22 = sphi %s1805_s22, %s2142_s22   ;;  %s1742_s21 = sphi %s1803_s21, %s2141_s21  }
   0x6   : > { %s1828_s27 = sadd.s32 1, %s1754_s24   ;;  %s29_s28 = sadd.s32 1, %s1750_s23 }
   0x7   : > { %s26_s29 = ssub.s32 %s1754_s24, %s1828_s27  ;;  %p36_p0 = scmp.ne.s32.totalorder %s1750_s23, %s1746_s22 }
   0x8   : > { %p27_p1 = scmp.eq.s32.totalorder %s26_s29, 0  ;;  %p37_p2 = scmp.eq.s32.totalorder %s1754_s24, 0 }
   0x9   : > { %p42_p3 = scmp.ne.s32.totalorder %s1746_s22, %s1742_s21  ;;  %p43_p4 = scmp.eq.s32.totalorder %s1824_s25, 0 }
   0xa   : > { %s1840_s30 = scalar_select %p27_p1, %s1750_s23, %s29_s28  }
   0xb   : > { %p1842_p5 = por %p37_p2, %p36_p0  ;;  %p1846_p6 = por %p43_p4, %p42_p3 }
   0xc   : > { %p171_p7 = scmp.eq.s32.totalorder %s1824_s25, 1  ;;  %p177_p8 = scmp.eq.s32.totalorder %s1418_s26, 1 }
   0xd   : > { %s2131_s8 = scalar_select %p1846_p6, 1, 0 }
   0xe   : > { %p1598_p10 = scmp.lt.s32.totalorder %s1754_s24, 2  ;;  %p1853_p11 = por %p171_p7, %p36_p0 }
   0xf   : > { %p1857_p12 = por %p177_p8, %p42_p3  ;;  %s212_s11 = sand.u32 1, %s1750_s23  }
  0x10   : > { %s2132_s9 = scalar_select %p1853_p11, 1, 0 }
  0x11   : > { %s2133_s10 = scalar_select %p1857_p12, 1, 0 }
  0x12   : > { %s1422_s12 = sshll.u32 %s1754_s24, 7  ;;  %s1421_s13 = sshll.u32 %s212_s11, 3 }
  0x13   : > { %s1866_s16 = scalar_lea.hbm %s2121_s0, %s1422_s12  ;;  %s216_s17 = scalar_lea.vmem [#allocation2], %s1421_s13 }
  0x14   : > { %s223_s18 = sshll.u32 %s216_s17, 4  ;;  %p1870_p13 = pnand %p1598_p10, %p1842_p5  ;;  %s1874_s18 = int_to_ptr.vmem [resolvable:$true] %s223_s18 }
  0x15   : > { %s213_s20 = scalar_lea.sflag [#allocation3], %s212_s11  ;;  %s1662_s26 = scalar_lea.hbm %s1866_s16, 128 }
  0x16   : > { %p1663_p2 = scmp.ne.s32.totalorder %s1866_s16, %s1662_s26  ;;  %p1664_p3 = pneg %p1870_p13 }
  0x17   : > { %s1667_s7 = scalar_lea.hbm %s2121_s0, 256  ;;  %p1668_p5 = scmp.lt.s32.totalorder %s1866_s16, %s2121_s0 }
  0x18   : > { %p1665_p4 = pnand %p1664_p3, %p1663_p2  ;;  %p1669_p8 = scmp.lt.s32.totalorder %s1667_s7, %s1662_s26 }
  0x1a   : > { %p1666_p7 = pneg %p1665_p4  ;;  %p1670_p10 = por %p1669_p8, %p1668_p5 }
  0x1c   : > { %p1671_p9 = pnand %p1670_p10, %p1666_p7 }
  0x1e   : > { %1674 = shalt.err (!%p1671_p9)
}
  0x1f   : > { %s1675_s11 = scalar_lea.vmem %s1874_s18, 128  ;;  %s1756_s14 = smov [#allocation2]  }
  0x20   : > { %p1676_p0 = scmp.ne.s32.totalorder %s1874_s18, %s1675_s11  ;;  %s1680_s15 = sshll.u32 %s1756_s14, 4  ;;  %s1681_s15 = int_to_ptr.vmem [resolvable:$false] %s1680_s15 }
  0x21   : > { %s1682_s17 = scalar_lea.vmem %s1681_s15, 256  ;;  %p1683_p4 = scmp.lt.s32.totalorder %s1874_s18, %s1681_s15 }
  0x22   : > { %p1678_p1 = pnand %p1676_p0, %p1664_p3  ;;  %p1684_p12 = scmp.lt.s32.totalorder %s1682_s17, %s1675_s11 }
  0x24   : > { %p1679_p2 = pneg %p1678_p1  ;;  %p1685_p11 = por %p1684_p12, %p1683_p4 }
  0x26   : > { %p1686_p6 = pnand %p1685_p11, %p1679_p2 }
  0x28   : > { %1689 = shalt.err (!%p1686_p6)
}
  0x29   : > { %1593 = dma.hbm_to_vmem [thread:$0]  (!%p1870_p13), %s1866_s16, 128, %s1874_s18, %s213_s20  }
  0x2a   : > { %p2135_p9 = scmp.lt.s32.totalorder %s1754_s24, 3  ;;  %p2136_p7 = scmp.ge.s32.totalorder %s1754_s24, 1 }
  0x2c   : > { %p229_p0 = pnand %p2136_p7, %p2135_p9 }
  0x2d   : > { %s1901_s26 = sand.u32 (!%p229_p0), 1, %s1746_s22   ;;  %p2137_p6 = scmp.ne.s32.totalorder (!%p229_p0), %s2131_s8, 0 }
  0x2e   : > { %232 = sbr.rel (%p229_p0) target bundleno = 2380 (0x94c), region = 44  ;;  %s1424_s28 = sshll.u32 (!%p229_p0), %s1901_s26, 3 }
  0x2f   : > { %s235_s29 = scalar_lea.sflag (!%p229_p0), [#allocation3], %s1901_s26  ;;  %s238_s19 = scalar_lea.vmem (!%p229_p0), [#allocation2], %s1424_s28 }
  0x33   : > { %1733 = dma.done.wait (%p2137_p6), %s235_s29, 128  }
  0x34   : > { %1735 = vsyncadd (%p2137_p6), %s235_s29, 4294967168  ;;  %v1757_v0 = vmov 0.0   ;;  %vm1758_vm0 = vmmov 0   ;;  %v279_v1 = vld [vmem:[%s2122_s1 + $0x18] sm:$0xff]  ;;  %v278_v2 = vld [vmem:[%s2122_s1 + $0x10] sm:$0xff]  ;;  %vm284_vm1 = vcmask 261120  }
  0x35   : > { %1494 = vmatprep.subr.mxu1 %v1757_v0  ;;  %1502 = vmatprep.mubr.msk.f32.mxu1 %vm1758_vm0, %v1757_v0  ;;  %v277_v3 = vld [vmem:[%s2122_s1 + $0x8] sm:$0xff]  ;;  %v276_v4 = vld [vmem:[%s2122_s1] sm:$0xff]  ;;  %s1759_s17 = smov 104   ;;  %s1760_s29 = smov 120   ;;  %vm367_vm2 = vcmask 64512   ;;  %v1038_v57 = vld [vmem:[%s2123_s2 + $0x18] sm:$0xff] }
  0x36   : > { %1515 = vmatprep.subr.mxu0 %v1757_v0  ;;  %1517 = vmatprep.mubr.msk.f32.mxu0 %vm1758_vm0, %v1757_v0  ;;  %v1931_v5 = vld [vmem:[%s238_s19] sm:$0xff]  ;;  %s1761_s19 = smov 96   ;;  %s1762_s16 = smov 112   ;;  %v1037_v59 = vld [vmem:[%s2123_s2 + $0x10] sm:$0xff]  ;;  %vm1031_vm3 = vcmask 130048   ;;  %vm1033_vm4 = vcmask 195584  }
  0x37   : > { %1495 = vmatpush3.msra.mxu1 %v279_v1  ;;  %v1426_v6 = vld [vmem:[%s2126_s5] ss:$0 sm:$0xff]  ;;  %s1763_s18 = smov 64   ;;  %v1036_v60 = vld [vmem:[%s2123_s2 + $0x8] sm:$0xff]  ;;  %vm1235_vm5 = vcmask 523264   ;;  %s1335_s12 = scalar_lea.sflag [#allocation4], %s1901_s26 }
  0x38   : > { %1496 = vmatprep.subr.mxu1 %v1757_v0  ;;  %v1035_v61 = vld [vmem:[%s2123_s2] sm:$0xff]  ;;  %p2138_p12 = scmp.ne.s32.totalorder %s2132_s9, 0  ;;  %s1767_s11 = smov [#allocation5]  }
  0x39   : > { %1497 = vmatpush3.msra.mxu1 %v278_v2 }
  0x3a   : > { %1498 = vmatprep.subr.mxu1 %v1757_v0 }
  0x3b   : > { %1499 = vmatpush3.msra.mxu1 %v277_v3 }
  0x3c   : > { %1500 = vmatprep.subr.mxu1 %v1757_v0 }
  0x3d   : > { %1501 = vmatpush3.msra.mxu1 %v276_v4 }
  0x3e   : > { %1503 = vmatmul.mubr.msk.f32.vlgmr.msra.gmra.mxu1 %vm284_vm1, %v1931_v5  ;;  %1505 = vmatprep.subr.mxu1 %v1757_v0 }
  0x3f   : > { %1507 = vmatprep.mubr.msk.f32.mxu1 %vm1758_vm0, %v1757_v0 }
  0xfe   : > { %v354_v7 = vpop.f32.mrf.mxu1 }
  0xff   : > { %v355_v8 = vadd.f32 %v1426_v6, %v354_v7 }
 0x100   : > { %v1504_v9 = vpop.f32.mrf.mxu1 }
 0x101   : > { %363 = vrot.lane.b32.xlu1 %v355_v8, %s1759_s17  ;;  %359 = vrot.lane.b32.xlu0 %v355_v8, %s1760_s29  ;;  %s1764_s17 = smov 8   ;;  %s1765_s29 = smov 16  }
 0x105   : > { %365 = vrot.lane.b32.xlu1 %v355_v8, %s1761_s19  ;;  %361 = vrot.lane.b32.xlu0 %v355_v8, %s1762_s16  ;;  %s266_s16 = scalar_lea.vmem [#allocation5], %s1424_s28 }
 0x173   : > { %v364_v10 = vpop.permute.xlu1 %363  ;;  %v360_v11 = vpop.permute.xlu0 %359 }
 0x174   : > { %442 = vrot.lane.b32.xlu0 %v360_v11, %s1761_s19 }
 0x177   : > { %v366_v12 = vpop.permute.xlu1 %365  ;;  %v362_v13 = vpop.permute.xlu0 %361 }
 0x178   : > { %1506 = vmatpush3.xpose.msk.msra.mxu1 %vm367_vm2, %v366_v12  ;;  %594 = vrot.lane.b32.xlu0 %v364_v10, %s1761_s19 }
 0x179   : > { %518 = vrot.lane.b32.xlu1 %v362_v13, %s1761_s19  ;;  %1510 = vmatprep.subr.mxu1 %v1757_v0  ;;  %s1766_s19 = smov 24  }
 0x17b   : > { %1508 = vmatmul.mubr.msk.f32.vlgmr.msra.gmra.mxu1 %vm367_vm2, %v355_v8 }
 0x17c   : > { %706 = vrot.lane.b32.xlu0 %v355_v8, %s1763_s18  ;;  %1512 = vmatprep.mubr.msk.f32.mxu1 %vm1758_vm0, %v1757_v0 }
 0x17d   : > { %782 = vrot.lane.b32.xlu1 %v360_v11, %s1763_s18 }
 0x1e6   : > { %v443_v14 = vpop.permute.xlu0 %442 }
 0x1e7   : > { %1511 = vmatpush3.xpose.msk.msra.mxu1 %vm367_vm2, %v443_v14 }
 0x1e8   : > { %1520 = vmatprep.subr.mxu1 %v1757_v0 }
 0x1ea   : > { %1513 = vmatmul.mubr.msk.f32.vlgmr.msra.gmra.mxu1 %vm367_vm2, %v360_v11  ;;  %v595_v15 = vpop.permute.xlu0 %594 }
 0x1eb   : > { %v519_v16 = vpop.permute.xlu1 %518  ;;  %1521 = vmatpush3.xpose.msk.msra.mxu1 %vm367_vm2, %v595_v15  ;;  %1522 = vmatprep.mubr.msk.f32.mxu1 %vm1758_vm0, %v1757_v0 }
 0x1ec   : > { %1516 = vmatpush3.xpose.msk.msra.mxu0 %vm367_vm2, %v519_v16  ;;  %1530 = vmatprep.subr.mxu1 %v1757_v0 }
 0x1ed   : > { %1525 = vmatprep.subr.mxu0 %v1757_v0 }
 0x1ee   : > { %1523 = vmatmul.mubr.msk.f32.vlgmr.msra.gmra.mxu1 %vm367_vm2, %v364_v10  ;;  %v707_v17 = vpop.permute.xlu0 %706 }
 0x1ef   : > { %1518 = vmatmul.mubr.msk.f32.vlgmr.msra.gmra.mxu0 %vm367_vm2, %v362_v13  ;;  %v783_v18 = vpop.permute.xlu1 %782  ;;  %1532 = vmatprep.mubr.msk.f32.mxu1 %vm1758_vm0, %v1757_v0 }
 0x1f0   : > { %1526 = vmatpush3.msra.mxu0 %v707_v17  ;;  %1531 = vmatpush3.msra.mxu1 %v783_v18 }
 0x1f1   : > { %1527 = vmatprep.mubr.msk.f32.mxu0 %vm1758_vm0, %v1757_v0  ;;  %1535 = vmatprep.subr.mxu0 %v1757_v0 }
 0x1f2   : > { %1540 = vmatprep.subr.mxu1 %v1757_v0 }
 0x23b   : > { %v438_v19 = vpop.f32.mrf.mxu1 }
 0x23c   : > { %v670_v20 = vsel %vm367_vm2, %v438_v19, -inf }
 0x23d   : > { %v1509_v21 = vpop.f32.mrf.mxu1  ;;  %671 = vmax.xlane.f32.xlu1 %v670_v20 }
 0x23e   : > { %v1440_v21 = vld [vmem:[%s2126_s5 + $0x1] ss:$0 sm:$0xff] }
 0x2aa   : > { %v514_v22 = vpop.f32.mrf.mxu1 }
 0x2ab   : > { %v673_v23 = vsel %vm367_vm2, %v514_v22, -inf }
 0x2ac   : > { %674 = vmax.xlane.f32.xlu0 %v673_v23  ;;  %v1514_v24 = vpop.f32.mrf.mxu1 }
 0x2ae   : > { %v666_v25 = vpop.f32.mrf.mxu1 }
 0x2af   : > { %v590_v26 = vpop.f32.mrf.mxu0  ;;  %v679_v27 = vsel %vm367_vm2, %v666_v25, -inf }
 0x2b0   : > { %v676_v28 = vsel %vm367_vm2, %v590_v26, -inf  ;;  %680 = vmax.xlane.f32.xlu1 %v679_v27  ;;  %v1524_v29 = vpop.f32.mrf.mxu1 }
 0x2b1   : > { %v1519_v30 = vpop.f32.mrf.mxu0  ;;  %677 = vmax.xlane.f32.xlu0 %v676_v28 }
 0x2c1   : > { %858 = vrot.lane.b32.xlu1 %v362_v13, %s1763_s18 }
 0x2c6   : > { %v672_v31 = vpop.xlane.xlu1 %671 }
 0x2c7   : > { %v682_v32 = vsub.f32 %v438_v19, %v672_v31  ;;  %934 = vrot.lane.b32.xlu0 %v364_v10, %s1763_s18  ;;  %s1348_s18 = sshll.u32 %s266_s16, 4  ;;  %s1349_s18 = int_to_ptr.vmem [resolvable:$true] %s1348_s18 }
 0x2c8   : > { %s1690_s13 = scalar_lea.vmem %s1349_s18, 128 }
 0x2c9   : > { %v686_v33 = vmul.f32 1.442695, %v682_v32  ;;  %v1144_v32 = vld [vmem:[%s2124_s3 + $0x18] sm:$0xff]  ;;  %p1691_p11 = scmp.ne.s32.totalorder %s1349_s18, %s1690_s13 }
 0x2cb   : > { %1642 = vpow2.f32 %v686_v33  ;;  %v1142_v33 = vld [vmem:[%s2124_s3 + $0x8] sm:$0xff]  ;;  %p1692_p13 = pnand %p1691_p11, %p2138_p12 }
 0x2cd   : > { %p1693_p1 = pneg %p1692_p13 }
 0x2d8   : > { %v1643_v34 = vpop.eup %1642 }
 0x2d9   : > { %1528 = vmatmul.mubr.msk.f32.vlgmr.msra.gmra.mxu0 %vm367_vm2, %v1643_v34  ;;  %v694_v50 = vsel %vm367_vm2, %v1643_v34, 0.0  ;;  %v1141_v34 = vld [vmem:[%s2124_s3] sm:$0xff] }
 0x2da   : > { %1537 = vmatprep.mubr.msk.f32.mxu0 %vm1758_vm0, %v1757_v0 }
 0x335   : > { %v675_v35 = vpop.xlane.xlu0 %674 }
 0x336   : > { %v683_v36 = vsub.f32 %v514_v22, %v675_v35  ;;  %v1230_v35 = vld [vmem:[%s2125_s4 + $0x38] sm:$0xff] }
 0x338   : > { %v688_v37 = vmul.f32 1.442695, %v683_v36  ;;  %v1229_v36 = vld [vmem:[%s2125_s4 + $0x30] sm:$0xff] }
 0x339   : > { %v681_v38 = vpop.xlane.xlu1 %680 }
 0x33a   : > { %1644 = vpow2.f32 %v688_v37  ;;  %v685_v39 = vsub.f32 %v666_v25, %v681_v38  ;;  %v678_v40 = vpop.xlane.xlu0 %677  ;;  %v1228_v37 = vld [vmem:[%s2125_s4 + $0x28] sm:$0xff]  ;;  %v1227_v38 = vld [vmem:[%s2125_s4 + $0x20] sm:$0xff] }
 0x33b   : > { %v684_v41 = vsub.f32 %v590_v26, %v678_v40 }
 0x33c   : > { %v692_v42 = vmul.f32 1.442695, %v685_v39  ;;  %v1226_v39 = vld [vmem:[%s2125_s4 + $0x18] sm:$0xff] }
 0x33d   : > { %v690_v43 = vmul.f32 1.442695, %v684_v41  ;;  %v859_v44 = vpop.permute.xlu1 %858 }
 0x33e   : > { %1646 = vpow2.f32 %v692_v42  ;;  %1536 = vmatpush3.msra.mxu0 %v859_v44  ;;  %v935_v46 = vpop.permute.xlu0 %934  ;;  %v1442_v44 = vld [vmem:[%s2126_s5 + $0x4] ss:$0 sm:$0xff] }
 0x33f   : > { %1648 = vpow2.f32 %v690_v43  ;;  %1545 = vmatprep.subr.mxu0 %v1757_v0 }
 0x347   : > { %v1645_v45 = vpop.eup %1644 }
 0x348   : > { %1533 = vmatmul.mubr.msk.f32.vlgmr.msra.gmra.mxu1 %vm367_vm2, %v1645_v45  ;;  %v697_v47 = vsel %vm367_vm2, %v1645_v45, 0.0 }
 0x349   : > { %1541 = vmatpush3.msra.mxu1 %v935_v46  ;;  %698 = vadd.xlane.f32.xlu1 %v697_v47  ;;  %v1443_v46 = vld [vmem:[%s2126_s5 + $0x5] ss:$0 sm:$0xff] }
 0x34a   : > { %1542 = vmatprep.mubr.msk.f32.mxu1 %vm1758_vm0, %v1757_v0  ;;  %1556 = vmatprep.subr.mxu1 %v1757_v0 }
 0x34b   : > { %v1647_v48 = vpop.eup %1646 }
 0x34c   : > { %v1649_v49 = vpop.eup %1648  ;;  %1543 = vmatmul.mubr.msk.f32.vlgmr.msra.gmra.mxu1 %vm367_vm2, %v1647_v48  ;;  %v703_v52 = vsel %vm367_vm2, %v1647_v48, 0.0 }
 0x34d   : > { %1538 = vmatmul.mubr.msk.f32.vlgmr.msra.gmra.mxu0 %vm367_vm2, %v1649_v49  ;;  %695 = vadd.xlane.f32.xlu1 %v694_v50  ;;  %v700_v51 = vsel %vm367_vm2, %v1649_v49, 0.0  ;;  %v1225_v49 = vld [vmem:[%s2125_s4 + $0x10] sm:$0xff]  ;;  %v1224_v50 = vld [vmem:[%s2125_s4 + $0x8] sm:$0xff] }
 0x34e   : > { %701 = vadd.xlane.f32.xlu0 %v700_v51  ;;  %1553 = vmatprep.mubr.msk.f32.mxu0 %vm1758_vm0, %v1757_v0  ;;  %v1223_v51 = vld [vmem:[%s2125_s4] sm:$0xff] }
 0x34f   : > { %1564 = vmatprep.mubr.msk.f32.mxu1 %vm1758_vm0, %v1757_v0  ;;  %1546 = vmatpush3.msra.mxu0 %v1038_v57  ;;  %v1446_v57 = vld [vmem:[%s2126_s5 + $0x3] ss:$0 sm:$0xff] }
 0x350   : > { %1547 = vmatprep.subr.mxu0 %v1757_v0  ;;  %1557 = vmatpush3.msra.mxu1 %v1144_v32 }
 0x351   : > { %1548 = vmatpush3.msra.mxu0 %v1037_v59  ;;  %1558 = vmatprep.subr.mxu1 %v1757_v0 }
 0x352   : > { %704 = vadd.xlane.f32.xlu0 %v703_v52  ;;  %1549 = vmatprep.subr.mxu0 %v1757_v0  ;;  %v1444_v52 = vld [vmem:[%s2126_s5 + $0x2] ss:$0 sm:$0xff] }
 0x353   : > { %1550 = vmatpush3.msra.mxu0 %v1036_v60 }
 0x354   : > { %1551 = vmatprep.subr.mxu0 %v1757_v0 }
 0x355   : > { %1552 = vmatpush3.msra.mxu0 %v1035_v61 }
 0x356   : > { %1567 = vmatprep.subr.mxu0 %v1757_v0 }
 0x399   : > { %v778_v53 = vpop.f32.mrf.mxu0 }
 0x39b   : > { %v1529_v54 = vpop.f32.mrf.mxu0 }
 0x3d2   : > { %v699_v55 = vpop.xlane.xlu1 %698 }
 0x3d3   : > { %1650 = vrcp.f32 %v699_v55 }
 0x3d6   : > { %v696_v12 = vpop.xlane.xlu1 %695 }
 0x3d7   : > { %v702_v56 = vpop.xlane.xlu0 %701 }
 0x3d8   : > { %1652 = vrcp.f32 %v702_v56 }
 0x3db   : > { %v705_v58 = vpop.xlane.xlu0 %704 }
 0x3dc   : > { %1654 = vrcp.f32 %v705_v58 }
 0x3dd   : > { %1656 = vrcp.f32 %v696_v12 }
 0x3e0   : > { %v1651_v62 = vpop.eup %1650 }
 0x3e5   : > { %v1653_v4 = vpop.eup %1652 }
 0x3e9   : > { %v1655_v10 = vpop.eup %1654 }
 0x3ea   : > { %v1657_v13 = vpop.eup %1656 }
 0x3eb   : > { %v1014_v16 = vmul.f32 %v1657_v13, %v778_v53 }
 0x408   : > { %v854_v63 = vpop.f32.mrf.mxu1 }
 0x409   : > { %v1015_v1 = vmul.f32 %v1651_v62, %v854_v63 }
 0x40a   : > { %v1534_v2 = vpop.f32.mrf.mxu1 }
 0x40b   : > { %1019 = vrot.lane.b32.xlu0 %v1015_v1, %s1764_s17 }
 0x40c   : > { %v1006_v3 = vpop.f32.mrf.mxu1 }
 0x40d   : > { %v930_v6 = vpop.f32.mrf.mxu0  ;;  %v1017_v11 = vmul.f32 %v1655_v10, %v1006_v3 }
 0x40e   : > { %v1016_v7 = vmul.f32 %v1653_v4, %v930_v6  ;;  %v1544_v8 = vpop.f32.mrf.mxu1 }
 0x40f   : > { %v1539_v9 = vpop.f32.mrf.mxu0 }
 0x410   : > { %1023 = vrot.lane.b32.xlu1 %v1016_v7, %s1765_s29  ;;  %v1448_v9 = vld [vmem:[%s2126_s5 + $0x6] ss:$0 sm:$0xff] }
 0x414   : > { %1027 = vrot.lane.b32.xlu1 %v1017_v11, %s1766_s19  ;;  %v1449_v11 = vld [vmem:[%s2126_s5 + $0x7] ss:$0 sm:$0xff]  ;;  %s1451_s19 = sshll.u32 %s1824_s25, 7  ;;  %s1694_s25 = sshll.u32 %s1767_s11, 4  ;;  %s1695_s25 = int_to_ptr.vmem [resolvable:$false] %s1694_s25 }
 0x415   : > { %s1346_s8 = scalar_lea.hbm %s2127_s6, %s1451_s19  ;;  %s1696_s28 = scalar_lea.vmem %s1695_s25, 256 }
 0x416   : > { %p1697_p3 = scmp.lt.s32.totalorder %s1349_s18, %s1695_s25  ;;  %p1698_p5 = scmp.lt.s32.totalorder %s1696_s28, %s1690_s13 }
 0x418   : > { %p1699_p8 = por %p1698_p5, %p1697_p3 }
 0x41a   : > { %p1700_p10 = pnand %p1699_p8, %p1693_p1 }
 0x47d   : > { %v1020_v14 = vpop.permute.xlu0 %1019 }
 0x47e   : > { %v1030_v17 = vsel %vm367_vm2, %v1014_v16, %v1020_v14 }
 0x482   : > { %v1024_v15 = vpop.permute.xlu1 %1023 }
 0x483   : > { %v1032_v18 = vsel %vm1031_vm3, %v1030_v17, %v1024_v15 }
 0x486   : > { %v1028_v19 = vpop.permute.xlu1 %1027 }
 0x487   : > { %v1034_v20 = vsel %vm1033_vm4, %v1032_v18, %v1028_v19 }
 0x488   : > { %1554 = vmatmul.mubr.msk.f32.vlgmr.msra.gmra.mxu0 %vm284_vm1, %v1034_v20 }
 0x489   : > { %1583 = vmatprep.mubr.msk.f32.mxu0 %vm1758_vm0, %v1757_v0  ;;  %1568 = vmatpush3.msra.mxu0 %v1230_v35 }
 0x48a   : > { %1569 = vmatprep.subr.mxu0 %v1757_v0 }
 0x48b   : > { %1570 = vmatpush3.msra.mxu0 %v1229_v36 }
 0x48c   : > { %1571 = vmatprep.subr.mxu0 %v1757_v0 }
 0x48d   : > { %1572 = vmatpush3.msra.mxu0 %v1228_v37 }
 0x48e   : > { %1573 = vmatprep.subr.mxu0 %v1757_v0 }
 0x48f   : > { %1574 = vmatpush3.msra.mxu0 %v1227_v38 }
 0x490   : > { %1575 = vmatprep.subr.mxu0 %v1757_v0 }
 0x491   : > { %1576 = vmatpush3.msra.mxu0 %v1226_v39 }
 0x492   : > { %1577 = vmatprep.subr.mxu0 %v1757_v0 }
 0x493   : > { %1578 = vmatpush3.msra.mxu0 %v1225_v49 }
 0x494   : > { %1579 = vmatprep.subr.mxu0 %v1757_v0 }
 0x495   : > { %1580 = vmatpush3.msra.mxu0 %v1224_v50 }
 0x496   : > { %1581 = vmatprep.subr.mxu0 %v1757_v0 }
 0x497   : > { %1582 = vmatpush3.msra.mxu0 %v1223_v51 }
 0x548   : > { %v1112_v22 = vpop.f32.mrf.mxu0 }
 0x549   : > { %v1113_v23 = vadd.f32 %v1440_v21, %v1112_v22 }
 0x54a   : > { %v1555_v24 = vpop.f32.mrf.mxu0 }
 0x54b   : > { %v1116_v25 = vadd.f32 %v1113_v23, %v1931_v5  ;;  %v1143_v5 = vld [vmem:[%s2124_s3 + $0x10] sm:$0xff] }
 0x54c   : > { %1559 = vmatpush3.msra.mxu1 %v1143_v5 }
 0x54d   : > { %v1117_v26 = vsel %vm284_vm1, %v1116_v25, 0.0  ;;  %1560 = vmatprep.subr.mxu1 %v1757_v0 }
 0x54e   : > { %1118 = vadd.xlane.f32.xlu0 %v1117_v26  ;;  %1561 = vmatpush3.msra.mxu1 %v1142_v33 }
 0x54f   : > { %1562 = vmatprep.subr.mxu1 %v1757_v0 }
 0x550   : > { %1563 = vmatpush3.msra.mxu1 %v1141_v34 }
 0x5d7   : > { %v1119_v27 = vpop.xlane.xlu0 %1118 }
 0x5d8   : > { %v1121_v28 = vmul.f32 0.03125, %v1119_v27 }
 0x5da   : > { %v1122_v29 = vsub.f32 %v1116_v25, %v1121_v28 }
 0x5dc   : > { %v1123_v30 = vmul.f32 %v1122_v29, %v1122_v29 }
 0x5de   : > { %v1124_v31 = vsel %vm284_vm1, %v1123_v30, 0.0 }
 0x5df   : > { %1125 = vadd.xlane.f32.xlu1 %v1124_v31 }
 0x668   : > { %v1126_v40 = vpop.xlane.xlu1 %1125 }
 0x669   : > { %v1127_v41 = vmul.f32 0.03125, %v1126_v40 }
 0x66b   : > { %v1128_v42 = vadd.f32 1e-06, %v1127_v41 }
 0x66d   : > { %1658 = vrsqrt.f32 %v1128_v42 }
 0x67a   : > { %v1659_v43 = vpop.eup %1658 }
 0x67b   : > { %v1130_v45 = vmul.f32 %v1659_v43, %v1122_v29 }
 0x67d   : > { %v1135_v47 = vmul.f32 %v1442_v44, %v1130_v45 }
 0x67f   : > { %v1140_v48 = vadd.f32 %v1443_v46, %v1135_v47 }
 0x681   : > { %1565 = vmatmul.mubr.msk.f32.vlgmr.msra.gmra.mxu1 %vm284_vm1, %v1140_v48 }
 0x741   : > { %v1218_v53 = vpop.f32.mrf.mxu1 }
 0x742   : > { %v1219_v54 = vadd.f32 %v1444_v52, %v1218_v53 }
 0x743   : > { %v1566_v55 = vpop.f32.mrf.mxu1 }
 0x744   : > { %v1222_v56 = vmax.f32 %v1219_v54, 0.0 }
 0x746   : > { %1584 = vmatmul.mubr.msk.f32.vlgmr.msra.gmra.mxu0 %vm1235_vm5, %v1222_v56 }
 0x806   : > { %v1305_v0 = vpop.f32.mrf.mxu0 }
 0x807   : > { %v1306_v58 = vadd.f32 %v1446_v57, %v1305_v0 }
 0x808   : > { %v1585_v59 = vpop.f32.mrf.mxu0 }
 0x809   : > { %v1309_v60 = vadd.f32 %v1306_v58, %v1140_v48 }
 0x80b   : > { %v1310_v61 = vsel %vm284_vm1, %v1309_v60, 0.0 }
 0x80c   : > { %1311 = vadd.xlane.f32.xlu0 %v1310_v61 }
 0x895   : > { %v1312_v62 = vpop.xlane.xlu0 %1311 }
 0x896   : > { %v1313_v63 = vmul.f32 0.03125, %v1312_v62 }
 0x898   : > { %v1314_v1 = vsub.f32 %v1309_v60, %v1313_v63 }
 0x89a   : > { %v1315_v2 = vmul.f32 %v1314_v1, %v1314_v1 }
 0x89c   : > { %v1316_v3 = vsel %vm284_vm1, %v1315_v2, 0.0 }
 0x89d   : > { %1317 = vadd.xlane.f32.xlu0 %v1316_v3 }
 0x926   : > { %v1318_v4 = vpop.xlane.xlu0 %1317 }
 0x927   : > { %v1319_v6 = vmul.f32 0.03125, %v1318_v4 }
 0x929   : > { %v1320_v7 = vadd.f32 1e-06, %v1319_v6 }
 0x92b   : > { %1660 = vrsqrt.f32 %v1320_v7 }
 0x938   : > { %v1661_v8 = vpop.eup %1660 }
 0x939   : > { %v1322_v10 = vmul.f32 %v1661_v8, %v1314_v1 }
 0x93b   : > { %v1327_v12 = vmul.f32 %v1448_v9, %v1322_v10 }
 0x93d   : > { %v1332_v13 = vadd.f32 %v1449_v11, %v1327_v12 }
 0x93f   : > { %1333 = vst.msk [vmem:[%s266_s16] sm:$0xff] %vm284_vm1, %v1332_v13 }
 0x940   : > { %1703 = shalt.err (!%p1700_p10)
}
 0x941   : > { %s1704_s14 = scalar_lea.hbm %s1346_s8, 128  ;;  %s1708_s17 = scalar_lea.hbm %s2127_s6, 256 }
 0x942   : > { %p1705_p2 = scmp.ne.s32.totalorder %s1346_s8, %s1704_s14  ;;  %p1709_p7 = scmp.lt.s32.totalorder %s1346_s8, %s2127_s6 }
 0x943   : > { %p1710_p0 = scmp.lt.s32.totalorder %s1708_s17, %s1704_s14 }
 0x944   : > { %p1706_p4 = pnand %p1705_p2, %p2138_p12 }
 0x945   : > { %p1711_p6 = por %p1710_p0, %p1709_p7 }
 0x946   : > { %p1707_p9 = pneg %p1706_p4 }
 0x948   : > { %p1712_p11 = pnand %p1711_p6, %p1707_p9 }
 0x94a   : > { %1715 = shalt.err (!%p1712_p11)
}
 0x94b   : > { %1588 = dma.vmem_to_hbm [thread:$0]  (%p2138_p12), %s1349_s18, 128, %s1346_s8, %s1335_s12  }
 0x94c PF: > { %s1360_s16 = sand.u32 1, %s1742_s21   ;;  %p2139_p13 = scmp.ne.s32.totalorder %s2133_s10, 0 }
 0x94d   : > { %p2140_p1 = scmp.ge.s32.totalorder %s1754_s24, 2  ;;  %s1361_s20 = scalar_lea.sflag [#allocation4], %s1360_s16 }
 0x94f   : > { %p1595_p3 = pnand %p2140_p1, %p2139_p13 }
 0x951   : > { %p1596_p5 = pneg %p1595_p3 }
 0x953   : > { %1737 = dma.done.wait (%p1596_p5), %s1361_s20, 128  }
 0x954   : > { %1739 = vsyncadd (%p1596_p5), %s1361_s20, 4294967168  ;;  %p19_p8 = scmp.ge.s32.totalorder %s1828_s27, 4   ;;  %s2141_s21 = smov %s1746_s22 }
 0x955   : > { %s2142_s22 = smov %s1750_s23  ;;  %s2143_s23 = smov %s1840_s30 }
 0x956   : > { %s2144_s24 = smov %s1828_s27  ;;  %21 = sbr.rel (!%p19_p8) target bundleno = 5 (0x5), region = 89 }
 0x95b   :  { %1366 = vsyncpa [#allocation3], 1 }
 0x95c   :  { %1368 = vsyncpa [#allocation3 + $0x1], 1 }
 0x95d   :  { %1369 = vsyncpa [#allocation4], 1 }
 0x95e   :  { %1371 = vsyncpa [#allocation4 + $0x1], 1 }

</bundles_post_ra>
